<compile_context>
chip_gen: v7x
topology: tpu7x:2x2x1
jax: 0.10.0
libtpu: 0.0.40
codegen_flags: <defaults>
</compile_context>

<pallas_src>
import math

import jax
import jax.numpy as jnp
from jax.experimental import pallas as pl
from jax.experimental.pallas import tpu as pltpu


def _round_up(x, m):
    return ((x + m - 1) // m) * m


def _cdiv(a, b):
    return (a + b - 1) // b


def _make_sine_pe_kernel(pack):
    def kernel(x_ref, consts_ref, out_ref):
        # x_ref     : (rows, pack)   packed cumulative positions (pack logical
        #                            rows per 128-lane physical output row)
        # consts_ref: (pack+1, W)    rows 0..pack-1: inv_freq masked to lane
        #                            slot p; row `pack`: phase (pi/2 on cos lanes)
        # out_ref   : (rows, W)      W = pack * num_pos_feats (lane-dense)
        angle = consts_ref[pack:pack + 1, :]                     # (1, W) phase
        for p in range(pack):                                    # unrolled (pack small)
            angle = angle + x_ref[:, p:p + 1] * consts_ref[p:p + 1, :]
        out_ref[...] = jnp.sin(angle)                            # cos lanes via +pi/2
    return kernel


def _sincos_reference(x_embed, num_pos_feats, temperature):
    """Plain-JAX transcription of the PyTorch sin/cos interleave."""
    D = int(num_pos_feats)
    dim_t = jnp.arange(D, dtype=jnp.float32)
    dim_t = jnp.asarray(temperature, jnp.float32) ** (
        2.0 * jnp.floor_divide(dim_t, 2.0) / D)
    pos = x_embed[..., None] / dim_t
    return jnp.stack(
        (jnp.sin(pos[..., 0::2]), jnp.cos(pos[..., 1::2])), axis=-1
    ).reshape(*x_embed.shape, D)


# Below ~1 MiB of output, pallas_call launch + per-step overhead dominates.
_SMALL_FALLBACK_BYTES = 1 << 20


def position_embedding_sine(mask, num_pos_feats=64, temperature=10000.0,
                            normalize=False, scale=None, block_rows=None,
                            use_pallas=None):
    """Pallas implementation of PositionEmbeddingSine.forward.

    mask: (B, L) int/bool array, 1 == valid.
    Returns (B, L, num_pos_feats) float32.
    """
    if scale is None:
        scale = 2.0 * math.pi
    B, L = mask.shape
    D = int(num_pos_feats)
    assert D % 2 == 0, "num_pos_feats must be even (matches the stack/flatten)"

    # --- cheap O(B*L) prefix work (cross-tile dependency) in plain JAX -------
    x_embed = jnp.cumsum(mask.astype(jnp.float32), axis=1)            # (B, L)
    if normalize:
        eps = 1e-6
        x_embed = x_embed / (x_embed[:, -1:] + eps) * scale

    N = B * L
    if use_pallas is None:
        use_pallas = N * D * 4 >= _SMALL_FALLBACK_BYTES
    if not use_pallas:
        return _sincos_reference(x_embed, D, temperature)

    # --- lane packing: `pack` logical rows per 128-lane physical row ---------
    pack = 128 // D if (D < 128 and 128 % D == 0) else 1
    W = pack * D

    # --- per-lane constants (computed once, tiny) -----------------------------
    dims = jnp.arange(D, dtype=jnp.float32)
    dim_t = jnp.asarray(temperature, jnp.float32) ** (
        2.0 * jnp.floor_divide(dims, 2.0) / D)                         # (D,)
    inv_freq = 1.0 / dim_t
    phase = jnp.where(jnp.arange(D) % 2 == 1,
                      jnp.float32(math.pi / 2.0), jnp.float32(0.0))    # cos = sin(.+pi/2)
    const_rows = []
    for p in range(pack):    # inv_freq masked to its lane slot -> no in-kernel select
        const_rows.append(
            jnp.zeros((W,), jnp.float32).at[p * D:(p + 1) * D].set(inv_freq))
    const_rows.append(jnp.tile(phase, pack))
    consts = jnp.stack(const_rows, axis=0)                              # (pack+1, W)

    # --- pack x: (N,) -> (R, pack), padding N up to a multiple of `pack` -----
    x_flat = x_embed.reshape(-1)
    Np = _round_up(N, pack)
    if Np != N:
        x_flat = jnp.pad(x_flat, (0, Np - N))
    R = Np // pack
    x_packed = x_flat.reshape(R, pack)

    # --- row-tile sizing from *padded* VMEM bytes -----------------------------
    #   out block : rows * round_up(W,128) * 4 B per buffer
    #   x   block : rows * 128 * 4 B per buffer (pack lanes pad to 128)
    # double-buffered total kept <= ~8 MiB (safe on v5e's 16 MiB scoped VMEM).
    if block_rows is None:
        per_row_dbuf = 2 * 4 * (_round_up(W, 128) + 128)
        budget = 8 * 1024 * 1024
        rows_budget = max(8, (budget // per_row_dbuf) // 8 * 8)
        rows_mc = max(8, _round_up(_cdiv(R, 8), 8))   # >=8 grid steps for v7x megacore
        rows = min(rows_budget, rows_mc)
    else:
        rows = max(8, (int(block_rows) // 8) * 8)
    grid = (_cdiv(R, rows),)

    out_packed = pl.pallas_call(
        _make_sine_pe_kernel(pack),
        out_shape=jax.ShapeDtypeStruct((R, W), jnp.float32),
        grid_spec=pltpu.PrefetchScalarGridSpec(
            num_scalar_prefetch=0,
            grid=grid,
            in_specs=[
                pl.BlockSpec((rows, pack), lambda g: (g, 0)),    # packed x rows
                pl.BlockSpec((pack + 1, W), lambda g: (0, 0)),   # resident constants
            ],
            out_specs=pl.BlockSpec((rows, W), lambda g: (g, 0)),
        ),
        compiler_params=pltpu.CompilerParams(
            dimension_semantics=("parallel",),
        ),
    )(x_packed, consts)

    out = out_packed.reshape(Np, D)
    if Np != N:
        out = out[:N]
    return out.reshape(B, L, D)


class PositionEmbeddingSinePallas:
    """Mirror of the PyTorch PositionEmbeddingSine module."""

    def __init__(self, num_pos_feats=64, temperature=10000, normalize=False,
                 scale=None):
        self.num_pos_feats = num_pos_feats
        self.temperature = float(temperature)
        self.normalize = normalize
        if scale is not None and normalize is False:
            raise ValueError('normalize should be True if scale is passed')
        if scale is None:
            scale = 2 * math.pi
        self.scale = float(scale)

    def __call__(self, x, mask, use_pallas=None):
        assert mask is not None
        # x only contributes device/dtype in the reference; shapes come from mask.
        return position_embedding_sine(
            mask,
            num_pos_feats=self.num_pos_feats,
            temperature=self.temperature,
            normalize=self.normalize,
            scale=self.scale,
            use_pallas=use_pallas,
        )


def _reference(mask, num_pos_feats, temperature, normalize, scale):
    """Plain-JAX transcription of the PyTorch forward (for checking)."""
    x_embed = jnp.cumsum(mask.astype(jnp.float32), axis=1)
    if normalize:
        eps = 1e-6
        x_embed = x_embed / (x_embed[:, -1:] + eps) * scale
    return _sincos_reference(x_embed, num_pos_feats, temperature)


if __name__ == "__main__":
    key = jax.random.PRNGKey(0)
    k_mask, k_mask2, k_mask3, k_x = jax.random.split(key, 4)

    num_pos_feats = 64
    temperature = 10000.0
    TOL = dict(atol=1e-4, rtol=1e-5)

    # --- small demo shapes through the module (auto path) --------------------
    B, L, d_model = 2, 8, 32
    x = jax.random.normal(k_x, (B, L, d_model), dtype=jnp.float32)
    mask = (jax.random.uniform(k_mask, (B, L)) > 0.3).astype(jnp.int32)
    module = PositionEmbeddingSinePallas(num_pos_feats=num_pos_feats,
                                         temperature=temperature)
    out = jax.block_until_ready(module(x, mask))
    ref = _reference(mask, num_pos_feats, temperature, False, 2 * math.pi)
    assert out.shape == (B, L, num_pos_feats)
    assert out.dtype == jnp.float32
    assert jnp.allclose(out, ref, **TOL)

    # --- same small shape, forcing the Pallas kernel path --------------------
    out_k = jax.block_until_ready(position_embedding_sine(
        mask, num_pos_feats=num_pos_feats, temperature=temperature,
        use_pallas=True))
    assert jnp.allclose(out_k, ref, **TOL)

    # --- normalized config, multiple grid steps, Pallas path -----------------
    B2, L2 = 2, 96
    mask2 = (jax.random.uniform(k_mask2, (B2, L2)) > 0.3).astype(jnp.int32)
    out_n = jax.block_until_ready(position_embedding_sine(
        mask2, num_pos_feats=num_pos_feats, temperature=temperature,
        normalize=True, scale=2 * math.pi, use_pallas=True))
    ref_n = _reference(mask2, num_pos_feats, temperature, True, 2 * math.pi)
    assert jnp.allclose(out_n, ref_n, **TOL)

    # --- odd number of rows (exercises pack-padding + partial last block) ----
    B3, L3 = 3, 7
    mask3 = (jax.random.uniform(k_mask3, (B3, L3)) > 0.5).astype(jnp.int32)
    out_o = jax.block_until_ready(position_embedding_sine(
        mask3, num_pos_feats=num_pos_feats, temperature=temperature,
        use_pallas=True))
    ref_o = _reference(mask3, num_pos_feats, temperature, False, 2 * math.pi)
    assert jnp.allclose(out_o, ref_o, **TOL)

    print("KERNEL_OK")
</pallas_src>

<mosaic_0001>
module attributes {stable_mosaic.version = 11 : i64} {
  func.func @kernel(%arg0: i32, %arg1: memref<8x2xf32, #tpu.memory_space<vmem>>, %arg2: memref<3x128xf32, #tpu.memory_space<vmem>>, %arg3: memref<8x128xf32, #tpu.memory_space<vmem>>) attributes {dimension_semantics = [#tpu.dimension_semantics<parallel>], iteration_bounds = array<i64: 1>, scalar_prefetch = 0 : i64, scratch_operands = 0 : i64, tpu.core_type = #tpu.core_type<tc>, window_params = [{transform_indices = @transform_0, window_bounds = array<i64: 8, 2>}, {pipeline_mode = #tpu.pipeline_mode<synchronous>, transform_indices = @transform_1, window_bounds = array<i64: 3, 128>}, {transform_indices = @transform_2, window_bounds = array<i64: 8, 128>}]} {
    %c2 = arith.constant 2 : index
    %c0 = arith.constant 0 : index
    %0 = vector.load %arg2[%c2, %c0] : memref<3x128xf32, #tpu.memory_space<vmem>>, vector<1x128xf32>
    %c0_0 = arith.constant 0 : index
    %c0_1 = arith.constant 0 : index
    %1 = vector.load %arg1[%c0_0, %c0_1] : memref<8x2xf32, #tpu.memory_space<vmem>>, vector<8x1xf32>
    %c0_2 = arith.constant 0 : index
    %c0_3 = arith.constant 0 : index
    %2 = vector.load %arg2[%c0_2, %c0_3] : memref<3x128xf32, #tpu.memory_space<vmem>>, vector<1x128xf32>
    %3 = vector.broadcast %1 : vector<8x1xf32> to vector<8x128xf32>
    %4 = vector.broadcast %2 : vector<1x128xf32> to vector<8x128xf32>
    %5 = arith.mulf %3, %4 : vector<8x128xf32>
    %6 = vector.broadcast %0 : vector<1x128xf32> to vector<8x128xf32>
    %7 = arith.addf %6, %5 : vector<8x128xf32>
    %c0_4 = arith.constant 0 : index
    %c1 = arith.constant 1 : index
    %8 = vector.load %arg1[%c0_4, %c1] : memref<8x2xf32, #tpu.memory_space<vmem>>, vector<8x1xf32>
    %c1_5 = arith.constant 1 : index
    %c0_6 = arith.constant 0 : index
    %9 = vector.load %arg2[%c1_5, %c0_6] : memref<3x128xf32, #tpu.memory_space<vmem>>, vector<1x128xf32>
    %10 = vector.broadcast %8 : vector<8x1xf32> to vector<8x128xf32>
    %11 = vector.broadcast %9 : vector<1x128xf32> to vector<8x128xf32>
    %12 = arith.mulf %10, %11 : vector<8x128xf32>
    %13 = arith.addf %7, %12 : vector<8x128xf32>
    %14 = math.sin %13 : vector<8x128xf32>
    %c0_7 = arith.constant 0 : index
    %c0_8 = arith.constant 0 : index
    %15 = vector.load %arg3[%c0_7, %c0_8] : memref<8x128xf32, #tpu.memory_space<vmem>>, vector<8x128xf32>
    tpu.vector_store %arg3[%c0_7, %c0_8], %14 {strides = array<i32>} : memref<8x128xf32, #tpu.memory_space<vmem>>, vector<8x128xf32>,
    return
  }
  func.func @transform_0(%arg0: i32) -> (i32, i32) {
    %c0_i32 = arith.constant 0 : i32
    %c0_i32_0 = arith.constant 0 : i32
    return %arg0, %c0_i32 : i32, i32
  }
  func.func @transform_1(%arg0: i32) -> (i32, i32) {
    %c0_i32 = arith.constant 0 : i32
    %c0_i32_0 = arith.constant 0 : i32
    %c0_i32_1 = arith.constant 0 : i32
    return %c0_i32, %c0_i32_0 : i32, i32
  }
  func.func @transform_2(%arg0: i32) -> (i32, i32) {
    %c0_i32 = arith.constant 0 : i32
    %c0_i32_0 = arith.constant 0 : i32
    return %arg0, %c0_i32 : i32, i32
  }
}

</mosaic_0001>

<bundles_post_ra>
// kernel: tpu_custom_call.1
= control target key start
LH: loop header
LB: loop body
LE: loop exit
PB: predicated region body
PF: predicated region fallthrough
CT: control target
= control target key end

     0   :  { %v210_v1 = vmov 0   ;;  %s279_s0 = inlined_call_operand.vmem [shape: f32[8,2], index: 0, kind: input, shape index: {}]   ;;  %s280_s1 = inlined_call_operand.vmem [shape: f32[3,128], index: 1, kind: input, shape index: {}]   ;;  %s281_s2 = inlined_call_operand.hbm [shape: f32[8,128], index: 2, kind: output, shape index: {}]  }
   0x1   :  { %v13_v0 = vld [vmem:[%s279_s0] sm:$0xff]  ;;  %180 = vset.pattern.permute.xlu0 %v210_v1 }
   0x2   :  { %7 = vsyncpa [#allocation3], 0  ;;  %17 = vperm.xlu0 %180, %v13_v0   ;;  %v211_v2 = vmov 1   ;;  %v160_v3 = vld [vmem:[%s280_s1] ss:$0 sm:$0xff]  ;;  %s218_s0 = smov [#allocation2]  }
   0x3   :  { %v161_v6 = vld [vmem:[%s280_s1 + $0x2] ss:$0 sm:$0xff]  ;;  %v162_v7 = vld [vmem:[%s280_s1 + $0x1] ss:$0 sm:$0xff]  ;;  %v212_v23 = vmov 2102212464  }
   0x4   :  { %v213_v25 = vmov 920167782   ;;  %v214_v29 = vmov 1326507024   ;;  %v215_v31 = vmov 683565275  }
   0x5   :  { %v216_v33 = vmov 2475754826   ;;  %v217_v36 = vmov 2131351028   ;;  %s152_s1 = sshll.u32 %s218_s0, 4  ;;  %s153_s1 = int_to_ptr.vmem [resolvable:$true] %s152_s1 }
   0x6   :  { %181 = vset.pattern.permute.xlu0 %v211_v2  ;;  %s186_s17 = scalar_lea.vmem %s153_s1, 128  ;;  %p191_p1 = scmp.lt.s32.totalorder %s153_s1, %s153_s1 }
   0x7   :  { %32 = vperm.xlu0 %181, %v13_v0   ;;  %p187_p0 = scmp.ne.s32.totalorder %s153_s1, %s186_s17  ;;  %p192_p2 = scmp.lt.s32.totalorder %s186_s17, %s186_s17 }
   0x9   :  { %p193_p3 = por %p192_p2, %p191_p1 }
   0xb   :  { %p194_p4 = pnand %p193_p3, %p187_p0 }
  0x81   :  { %v18_v4 = vpop.permute.xlu0 %17 }
  0x82   :  { %v24_v5 = vmul.f32 %v160_v3, %v18_v4 }
  0x84   :  { %v29_v9 = vadd.f32 %v161_v6, %v24_v5 }
  0x86   :  { %v33_v8 = vpop.permute.xlu0 %32 }
  0x87   :  { %v39_v10 = vmul.f32 %v162_v7, %v33_v8 }
  0x89   :  { %v246_v11 = vadd.f32 %v39_v10, %v29_v9 }
  0x8b   :  { %v44_v12 = vand.u32 2139095040, %v246_v11  ;;  %v41_v13 = vand.u32 2147483647, %v246_v11  ;;  %vm43_vm7 = vcmp.lt.s32.totalorder %v246_v11, 0  ;;  %vm133_vm12 = vweird.f32 %v246_v11 }
  0x8d   :  { %v45_v14 = vshrl.u32 %v44_v12, 23  ;;  %v48_v16 = vand.u32 8388607, %v41_v13  ;;  %vm42_vm8 = vcmp.le.f32.partialorder %v41_v13, 0.7853982 }
  0x8f   :  { %v163_v15 = vadd.s32 4294967169, %v45_v14  ;;  %v49_v19 = vor.u32 8388608, %v48_v16 }
  0x91   :  { %v51_v17 = vadd.s32 1, %v163_v15  ;;  %v89_v27 = vshll.u32 %v49_v19, 8 }
  0x93   :  { %vm52_vm0 = vcmp.gt.s32.totalorder %v51_v17, 0 }
  0x94   :  { %v53_v18 = vsel %vm52_vm0, %v51_v17, 0 }
  0x95   :  { %v55_v20 = vand.u32 31, %v53_v18  ;;  %v54_v21 = vshrl.u32 %v53_v18, 5 }
  0x97   :  { %v56_v22 = vsub.s32 32, %v55_v20  ;;  %v67_v24 = vshll.u32 %v212_v23, %v55_v20  ;;  %v70_v26 = vshll.u32 %v213_v25, %v55_v20  ;;  %v58_v32 = vshll.u32 %v215_v31, %v55_v20 }
  0x98   :  { %v61_v35 = vshll.u32 %v216_v33, %v55_v20  ;;  %v64_v38 = vshll.u32 %v217_v36, %v55_v20  ;;  %vm76_vm1 = vcmp.lt.s32.totalorder %v54_v21, 4  ;;  %vm73_vm2 = vcmp.lt.s32.totalorder %v54_v21, 1 }
  0x99   :  { %v68_v28 = vshrl.u32 %v213_v25, %v56_v22  ;;  %v71_v30 = vshrl.u32 %v214_v29, %v56_v22  ;;  %v59_v34 = vshrl.u32 %v216_v33, %v56_v22  ;;  %v62_v37 = vshrl.u32 %v217_v36, %v56_v22 }
  0x9a   :  { %v65_v39 = vshrl.u32 %v212_v23, %v56_v22  ;;  %v57_v43 = vshrl.u32 %v215_v31, %v56_v22  ;;  %vm74_vm3 = vcmp.lt.s32.totalorder %v54_v21, 2  ;;  %vm75_vm4 = vcmp.lt.s32.totalorder %v54_v21, 3 }
  0x9b   :  { %v69_v40 = vor.u32 %v68_v28, %v67_v24  ;;  %v72_v41 = vor.u32 %v71_v30, %v70_v26  ;;  %v60_v42 = vor.u32 %v59_v34, %v58_v32  ;;  %v63_v44 = vor.u32 %v62_v37, %v61_v35 }
  0x9c   :  { %v66_v45 = vor.u32 %v65_v39, %v64_v38 }
  0x9d   :  { %v82_v46 = vsel %vm76_vm1, %v69_v40, 920167782  ;;  %v86_v47 = vsel %vm76_vm1, %v72_v41, 1326507024  ;;  %v81_v49 = vsel %vm73_vm2, %v60_v42, %v63_v44  ;;  %v77_v52 = vsel %vm73_vm2, %v57_v43, %v60_v42 }
  0x9e   :  { %v78_v48 = vsel %vm76_vm1, %v66_v45, 2102212464  ;;  %v83_v50 = vsel %vm75_vm4, %v66_v45, %v82_v46  ;;  %v85_v51 = vsel %vm73_vm2, %v63_v44, %v66_v45  ;;  %v87_v55 = vsel %vm75_vm4, %v69_v40, %v86_v47 }
  0x9f   :  { %v79_v53 = vsel %vm75_vm4, %v63_v44, %v78_v48  ;;  %v84_v54 = vsel %vm74_vm3, %v81_v49, %v83_v50  ;;  %v88_v56 = vsel %vm74_vm3, %v85_v51, %v87_v55 }
  0xa0   :  { %v252_v57 = vmul.u32.u64.low %v89_v27, %v84_v54  ;;  %v253_v58 = vmul.u32.u64.high %v89_v27, %v84_v54, %v252_v57  ;;  %v255_v59 = vmul.u32.u64.low %v89_v27, %v88_v56  ;;  %v256_v60 = vmul.u32.u64.high %v89_v27, %v88_v56, %v255_v59 }
  0xa1   :  { %v80_v61 = vsel %vm74_vm3, %v77_v52, %v79_v53 }
  0xa2   :  { %v99_v62 = vadd.s32 1, %v253_v58  ;;  %v96_v63 = vmul.u32 %v89_v27, %v80_v61  ;;  %vm98_vm5 = vc.u32 %v256_v60, %v252_v57  ;;  %v97_v12 = vadd.s32 %v252_v57, %v256_v60 }
  0xa4   :  { %v100_v0 = vsel %vm98_vm5, %v99_v62, %v253_v58 }
  0xa5   :  { %v101_v1 = vadd.s32 %v100_v0, %v96_v63 }
  0xa7   :  { %v102_v2 = vadd.s32 536870912, %v101_v1 }
  0xa9   :  { %v103_v3 = vshrl.u32 %v102_v2, 30 }
  0xab   :  { %v104_v4 = vshll.u32 %v103_v3, 30  ;;  %v127_v25 = vsub.s32 4, %v103_v3 }
  0xad   :  { %v105_v5 = vsub.s32 %v101_v1, %v104_v4  ;;  %v128_v28 = vsel %vm43_vm7, %v127_v25, %v103_v3 }
  0xae   :  { %v130_v30 = vsel %vm42_vm8, 0, %v128_v28 }
  0xaf   :  { %v107_v6 = vsub.s32 0, %v105_v5  ;;  %v134_v31 = vadd.s32 3, %v130_v30 }
  0xb1   :  { %v164_v7 = vmin.u32 %v107_v6, %v105_v5  ;;  %v135_v32 = vand.u32 3, %v134_v31 }
  0xb3   :  { %v109_v8 = vclz %v164_v7  ;;  %vm140_vm9 = vcmp.eq.s32.totalorder %v135_v32, 2  ;;  %vm137_vm10 = vcmp.eq.s32.totalorder %v135_v32, 0  ;;  %vm136_vm11 = vcmp.lt.s32.totalorder %v135_v32, 2 }
  0xb5   :  { %v165_v9 = vadd.s32 4294967294, %v109_v8 }
  0xb7   :  { %vm166_vm6 = vcmp.lt.s32.totalorder %v165_v9, 0 }
  0xb8   :  { %v112_v10 = vsel %vm166_vm6, 0, %v165_v9 }
  0xb9   :  { %v113_v14 = vsub.s32 32, %v112_v10  ;;  %v117_v15 = vsub.s32 4294967266, %v112_v10  ;;  %v114_v16 = vshll.u32 %v105_v5, %v112_v10 }
  0xbb   :  { %v115_v17 = vshrl.u32 %v97_v12, %v113_v14  ;;  %v118_v18 = vadd.s32 127, %v117_v15 }
  0xbd   :  { %v116_v19 = vor.u32 %v115_v17, %v114_v16  ;;  %v119_v20 = vshll.u32 %v118_v18, 23 }
  0xbf   :  { %v120_v21 = vor.u32 4788187, %v119_v20  ;;  %v123_v23 = vcvt.s32.f32 %v116_v19 }
  0xc1   :  { %v121_v22 = vand.u32 2147483647, %v120_v21 }
  0xc3   :  { %v124_v24 = vmul.f32 %v123_v23, %v121_v22 }
  0xc5   :  { %v125_v26 = vxor.u32 2147483648, %v124_v24 }
  0xc7   :  { %v126_v27 = vsel %vm43_vm7, %v125_v26, %v124_v24 }
  0xc8   :  { %v129_v29 = vsel %vm42_vm8, %v246_v11, %v126_v27 }
  0xc9   :  { %182 = vcosq.f32 %v129_v29 }
  0xca   :  { %184 = vsinq.f32 %v129_v29 }
  0xd3   :  { %v183_v33 = vpop.eup %182 }
  0xd4   :  { %v185_v34 = vpop.eup %184  ;;  %v141_v35 = vxor.u32 2147483648, %v183_v33 }
  0xd5   :  { %v138_v36 = vxor.u32 2147483648, %v185_v34 }
  0xd6   :  { %v142_v37 = vsel %vm140_vm9, %v141_v35, %v185_v34 }
  0xd7   :  { %v139_v13 = vsel %vm137_vm10, %v183_v33, %v138_v36 }
  0xd8   :  { %v143_v38 = vsel %vm136_vm11, %v139_v13, %v142_v37 }
  0xd9   :  { %v144_v39 = vsel %vm133_vm12, nan, %v143_v38 }
  0xda   :  { %145 = vst [vmem:[#allocation2] sm:$0xff] %v144_v39 }
  0xdb   :  { %197 = shalt.err (!%p194_p4)
}
  0xdc   :  { %s198_s20 = scalar_lea.hbm %s281_s2, 128 }
  0xdd   :  { %p199_p5 = scmp.ne.s32.totalorder %s281_s2, %s198_s20  ;;  %p202_p6 = scmp.lt.u32.totalorder %s198_s20, %s281_s2 }
  0xdf   :  { %p204_p7 = pnand %p202_p6, %p199_p5 }
  0xe1   :  { %207 = shalt.err (!%p204_p7)
}
  0xe2   :  { %155 = dma.vmem_to_hbm [thread:$0]  %s153_s1, 128, %s281_s2, [#allocation3]  }
  0xe3   :  { %208 = dma.done.wait [#allocation3], 128  }
  0xe4   :  { %209 = vsyncadd [#allocation3], 4294967168 }
  0xe5   :  { %159 = vsyncpa [#allocation3], 1 }

</bundles_post_ra>
